<compile_context>
chip_gen: v7x
topology: tpu7x:2x2x1
jax: 0.10.0
libtpu: 0.0.40
codegen_flags: <defaults>
</compile_context>

<pallas_src>
import functools

import jax
import jax.numpy as jnp
from jax.experimental import pallas as pl
from jax.experimental.pallas import tpu as pltpu

LANE = 128  # lane width / MXU column granularity
SUBLANE = 8


def mlp_kernel(x_ref,
               w1_ref, b1_ref,
               w2_ref, b2_ref,
               w3_ref, b3_ref,
               w4_ref, b4_ref,
               o_ref):
    """Fused 4-layer MLP forward for one batch tile (weights resident in VMEM)."""
    cdt = w1_ref.dtype  # compute dtype for MXU operands (f32 or bf16)
    x = x_ref[...]

    h = jnp.dot(x, w1_ref[...], preferred_element_type=jnp.float32) + b1_ref[...]
    h = jnp.maximum(h.astype(cdt), 0.0)  # ReLU in compute dtype (bf16 VPU on v6e/v7x)

    h = jnp.dot(h, w2_ref[...], preferred_element_type=jnp.float32) + b2_ref[...]
    h = jnp.maximum(h.astype(cdt), 0.0)

    h = jnp.dot(h, w3_ref[...], preferred_element_type=jnp.float32) + b3_ref[...]
    h = jnp.maximum(h.astype(cdt), 0.0)

    out = jnp.dot(h, w4_ref[...], preferred_element_type=jnp.float32) + b4_ref[...]
    o_ref[...] = out.astype(o_ref.dtype)


def _round_up(n, m):
    return ((n + m - 1) // m) * m


def _vmem_cap_bytes():
    """Per-core scoped-VMEM ceiling with headroom for compiler scratch."""
    try:
        cap = pltpu.get_tpu_info().vmem_capacity_bytes
    except Exception:
        cap = 64 * 2**20  # safe default (v7x per-TC physical VMEM)
    # ~78% of physical: ≈100 MiB on 128 MiB chips (v5e/v6e), ≈50 MiB on v7x.
    return int(cap * 0.78)


def _select_batch_tile(batch):
    """Target a 256-row M tile; keep >=2 grid steps when batch permits (megacore)."""
    b8 = _round_up(max(batch, 1), SUBLANE)
    tile = min(256, b8)
    if b8 // tile < 2 and b8 >= 2 * SUBLANE:
        tile = max(SUBLANE, _round_up(b8 // 2, SUBLANE))
    return tile


def prepare_params(params, compute_dtype=jnp.float32):
    """Pad feature dims to LANE multiples and cast MXU operands ONCE.

    `params` holds w1..w4 as [in_features, out_features] and b1..b4 as
    (fan_out,) or (1, fan_out).  Returns (prepared_dict, output_size).
    Biases stay float32 (added to the f32 accumulator in the epilogue).
    """
    cdt = jnp.dtype(compute_dtype)

    def pad_w(w):
        rows = _round_up(w.shape[0], LANE)
        cols = _round_up(w.shape[1], LANE)
        return jnp.pad(w.astype(cdt),
                       ((0, rows - w.shape[0]), (0, cols - w.shape[1])))

    def pad_b(b):
        b = jnp.asarray(b, jnp.float32).reshape(1, -1)
        cols = _round_up(b.shape[1], LANE)
        return jnp.pad(b, ((0, 0), (0, cols - b.shape[1])))

    prepared = {}
    for i in range(1, 5):
        prepared[f"w{i}"] = pad_w(params[f"w{i}"])
        prepared[f"b{i}"] = pad_b(params[f"b{i}"])
    output_size = int(params["w4"].shape[1])
    return prepared, output_size


@functools.partial(jax.jit, static_argnames=("output_size", "batch_tile"))
def mlp_forward(x, prepared, output_size, batch_tile=None):
    """x: [B, input_size] float32.  `prepared` from prepare_params (padded/cast once)."""
    B, input_size = x.shape
    cdt = jnp.dtype(prepared["w1"].dtype)

    in_p = prepared["w1"].shape[0]
    hid_p = prepared["w1"].shape[1]
    out_p = prepared["w4"].shape[1]

    if batch_tile is None:
        batch_tile = _select_batch_tile(B)
    b_p = _round_up(B, batch_tile)

    # Per-call work on activations only: cast + pad the streamed x.
    xp = jnp.pad(x.astype(cdt), ((0, b_p - B), (0, in_p - input_size)))

    # ---- VMEM budget (resident weights + biases + double-buffered tiles + acts) ----
    itemsize = cdt.itemsize
    weight_bytes = (in_p * hid_p + 2 * hid_p * hid_p + hid_p * out_p) * itemsize
    bias_bytes = (3 * hid_p + out_p) * 4
    io_bytes = 2 * batch_tile * in_p * itemsize + 2 * batch_tile * out_p * 4
    act_bytes = 2 * batch_tile * hid_p * 4
    needed = weight_bytes + bias_bytes + io_bytes + act_bytes

    cap = _vmem_cap_bytes()
    vmem_limit = int(min(max(needed * 3 // 2, 32 * 2**20), cap))

    if needed > cap:
        # Resident-weight scheme does not fit this chip's VMEM: fall back to XLA.
        # TODO(synk): blocked-hidden Pallas kernel (extra grid axis + f32 acc scratch).
        h = jnp.maximum(
            jnp.dot(xp, prepared["w1"], preferred_element_type=jnp.float32)
            + prepared["b1"], 0.0).astype(cdt)
        h = jnp.maximum(
            jnp.dot(h, prepared["w2"], preferred_element_type=jnp.float32)
            + prepared["b2"], 0.0).astype(cdt)
        h = jnp.maximum(
            jnp.dot(h, prepared["w3"], preferred_element_type=jnp.float32)
            + prepared["b3"], 0.0).astype(cdt)
        out = (jnp.dot(h, prepared["w4"], preferred_element_type=jnp.float32)
               + prepared["b4"])
        return out[:B, :output_size]

    grid = (b_p // batch_tile,)

    # Grid-invariant operands: whole array resident in VMEM, single-buffered.
    vmem_spec = pl.BlockSpec(memory_space=pltpu.MemorySpace.VMEM)

    flops = 2 * b_p * (in_p * hid_p + 2 * hid_p * hid_p + hid_p * out_p)
    bytes_accessed = (xp.size * itemsize
                      + weight_bytes + bias_bytes
                      + b_p * out_p * 4)

    out_padded = pl.pallas_call(
        mlp_kernel,
        out_shape=jax.ShapeDtypeStruct((b_p, out_p), jnp.float32),
        grid_spec=pltpu.PrefetchScalarGridSpec(
            num_scalar_prefetch=0,
            grid=grid,
            in_specs=[
                pl.BlockSpec((batch_tile, in_p), lambda i: (i, 0)),  # x tile
                vmem_spec, vmem_spec,                                # w1, b1
                vmem_spec, vmem_spec,                                # w2, b2
                vmem_spec, vmem_spec,                                # w3, b3
                vmem_spec, vmem_spec,                                # w4, b4
            ],
            out_specs=pl.BlockSpec((batch_tile, out_p), lambda i: (i, 0)),
        ),
        compiler_params=pltpu.CompilerParams(
            dimension_semantics=("parallel",),
            vmem_limit_bytes=vmem_limit),
        cost_estimate=pl.CostEstimate(
            flops=flops, transcendentals=0, bytes_accessed=bytes_accessed),
    )(xp,
      prepared["w1"], prepared["b1"],
      prepared["w2"], prepared["b2"],
      prepared["w3"], prepared["b3"],
      prepared["w4"], prepared["b4"])

    return out_padded[:B, :output_size]


def init_params(key, input_size, hidden_size, output_size):
    """Deterministic init mirroring nn.Linear's uniform(-1/sqrt(fan_in), 1/sqrt(fan_in)).
    Weights stored as [in_features, out_features] (transpose of PyTorch)."""
    dims = [(input_size, hidden_size),
            (hidden_size, hidden_size),
            (hidden_size, hidden_size),
            (hidden_size, output_size)]
    params = {}
    for idx, (fan_in, fan_out) in enumerate(dims, start=1):
        key, kw, kb = jax.random.split(key, 3)
        bound = 1.0 / (fan_in ** 0.5)
        params[f"w{idx}"] = jax.random.uniform(
            kw, (fan_in, fan_out), jnp.float32, minval=-bound, maxval=bound)
        params[f"b{idx}"] = jax.random.uniform(
            kb, (fan_out,), jnp.float32, minval=-bound, maxval=bound)
    return params


def mlp_reference(x, params):
    h = jnp.maximum(x @ params["w1"] + params["b1"], 0.0)
    h = jnp.maximum(h @ params["w2"] + params["b2"], 0.0)
    h = jnp.maximum(h @ params["w3"] + params["b3"], 0.0)
    return h @ params["w4"] + params["b4"]


if __name__ == "__main__":
    key = jax.random.PRNGKey(0)
    input_size, hidden_size, output_size = 8, 32, 4
    batch = 256  # auto batch_tile=128 -> grid of 2 parallel steps (both v7x TCs busy)

    key, kx = jax.random.split(key)
    x = jax.random.normal(kx, (batch, input_size), jnp.float32)
    params = init_params(key, input_size, hidden_size, output_size)

    ref = mlp_reference(x, params)

    # f32 MXU-operand path: exact semantics, strict tolerance.
    prep_f32, out_size = prepare_params(params, compute_dtype=jnp.float32)
    out_f32 = jax.block_until_ready(mlp_forward(x, prep_f32, out_size))
    assert out_f32.shape == (batch, output_size)
    assert jnp.allclose(out_f32, ref, atol=1e-5, rtol=1e-5), "f32 mismatch vs reference"

    # bf16 MXU-operand path (f32 accumulation, f32 biases): loose tolerance.
    prep_bf16, _ = prepare_params(params, compute_dtype=jnp.bfloat16)
    out_bf16 = jax.block_until_ready(mlp_forward(x, prep_bf16, out_size))
    assert out_bf16.shape == (batch, output_size)
    assert jnp.allclose(out_bf16, ref, atol=1e-1, rtol=1e-1), "bf16 mismatch vs reference"

    print("KERNEL_OK")
</pallas_src>

<mosaic_0001>
module attributes {stable_mosaic.version = 11 : i64} {
  func.func @mlp_kernel(%arg0: i32, %arg1: memref<128x128xf32, #tpu.memory_space<vmem>>, %arg2: memref<128x128xf32, #tpu.memory_space<vmem>>, %arg3: memref<1x128xf32, #tpu.memory_space<vmem>>, %arg4: memref<128x128xf32, #tpu.memory_space<vmem>>, %arg5: memref<1x128xf32, #tpu.memory_space<vmem>>, %arg6: memref<128x128xf32, #tpu.memory_space<vmem>>, %arg7: memref<1x128xf32, #tpu.memory_space<vmem>>, %arg8: memref<128x128xf32, #tpu.memory_space<vmem>>, %arg9: memref<1x128xf32, #tpu.memory_space<vmem>>, %arg10: memref<128x128xf32, #tpu.memory_space<vmem>>) attributes {dimension_semantics = [#tpu.dimension_semantics<parallel>], iteration_bounds = array<i64: 2>, scalar_prefetch = 0 : i64, scratch_operands = 0 : i64, tpu.core_type = #tpu.core_type<tc>, window_params = [{transform_indices = @transform_0, window_bounds = array<i64: 128, 128>}, {pipeline_mode = #tpu.pipeline_mode<synchronous>, transform_indices = @transform_1, window_bounds = array<i64: 128, 128>}, {pipeline_mode = #tpu.pipeline_mode<synchronous>, transform_indices = @transform_2, window_bounds = array<i64: 1, 128>}, {pipeline_mode = #tpu.pipeline_mode<synchronous>, transform_indices = @transform_3, window_bounds = array<i64: 128, 128>}, {pipeline_mode = #tpu.pipeline_mode<synchronous>, transform_indices = @transform_4, window_bounds = array<i64: 1, 128>}, {pipeline_mode = #tpu.pipeline_mode<synchronous>, transform_indices = @transform_5, window_bounds = array<i64: 128, 128>}, {pipeline_mode = #tpu.pipeline_mode<synchronous>, transform_indices = @transform_6, window_bounds = array<i64: 1, 128>}, {pipeline_mode = #tpu.pipeline_mode<synchronous>, transform_indices = @transform_7, window_bounds = array<i64: 128, 128>}, {pipeline_mode = #tpu.pipeline_mode<synchronous>, transform_indices = @transform_8, window_bounds = array<i64: 1, 128>}, {transform_indices = @transform_9, window_bounds = array<i64: 128, 128>}]} {
    %c0 = arith.constant 0 : index
    %c0_0 = arith.constant 0 : index
    %0 = vector.load %arg1[%c0, %c0_0] : memref<128x128xf32, #tpu.memory_space<vmem>>, vector<128x128xf32>
    %c0_1 = arith.constant 0 : index
    %c0_2 = arith.constant 0 : index
    %1 = vector.load %arg2[%c0_1, %c0_2] : memref<128x128xf32, #tpu.memory_space<vmem>>, vector<128x128xf32>
    %cst = arith.constant dense<0.000000e+00> : vector<128x128xf32>
    %2 = tpu.matmul %0, %1, %cst {dimension_numbers = #tpu.dot_dimension_numbers<[1], [0], [0], [1], [0, 0, 1, 1], [], []>} : vector<128x128xf32>, vector<128x128xf32>, vector<128x128xf32> -> vector<128x128xf32>
    %c0_3 = arith.constant 0 : index
    %c0_4 = arith.constant 0 : index
    %3 = vector.load %arg3[%c0_3, %c0_4] : memref<1x128xf32, #tpu.memory_space<vmem>>, vector<1x128xf32>
    %4 = vector.broadcast %3 : vector<1x128xf32> to vector<128x128xf32>
    %5 = arith.addf %2, %4 : vector<128x128xf32>
    %cst_5 = arith.constant 0.000000e+00 : f32
    %6 = vector.broadcast %cst_5 : f32 to vector<128x128xf32>
    %7 = arith.maximumf %5, %6 : vector<128x128xf32>
    %c0_6 = arith.constant 0 : index
    %c0_7 = arith.constant 0 : index
    %8 = vector.load %arg4[%c0_6, %c0_7] : memref<128x128xf32, #tpu.memory_space<vmem>>, vector<128x128xf32>
    %cst_8 = arith.constant dense<0.000000e+00> : vector<128x128xf32>
    %9 = tpu.matmul %7, %8, %cst_8 {dimension_numbers = #tpu.dot_dimension_numbers<[1], [0], [0], [1], [0, 0, 1, 1], [], []>} : vector<128x128xf32>, vector<128x128xf32>, vector<128x128xf32> -> vector<128x128xf32>
    %c0_9 = arith.constant 0 : index
    %c0_10 = arith.constant 0 : index
    %10 = vector.load %arg5[%c0_9, %c0_10] : memref<1x128xf32, #tpu.memory_space<vmem>>, vector<1x128xf32>
    %11 = vector.broadcast %10 : vector<1x128xf32> to vector<128x128xf32>
    %12 = arith.addf %9, %11 : vector<128x128xf32>
    %cst_11 = arith.constant 0.000000e+00 : f32
    %13 = vector.broadcast %cst_11 : f32 to vector<128x128xf32>
    %14 = arith.maximumf %12, %13 : vector<128x128xf32>
    %c0_12 = arith.constant 0 : index
    %c0_13 = arith.constant 0 : index
    %15 = vector.load %arg6[%c0_12, %c0_13] : memref<128x128xf32, #tpu.memory_space<vmem>>, vector<128x128xf32>
    %cst_14 = arith.constant dense<0.000000e+00> : vector<128x128xf32>
    %16 = tpu.matmul %14, %15, %cst_14 {dimension_numbers = #tpu.dot_dimension_numbers<[1], [0], [0], [1], [0, 0, 1, 1], [], []>} : vector<128x128xf32>, vector<128x128xf32>, vector<128x128xf32> -> vector<128x128xf32>
    %c0_15 = arith.constant 0 : index
    %c0_16 = arith.constant 0 : index
    %17 = vector.load %arg7[%c0_15, %c0_16] : memref<1x128xf32, #tpu.memory_space<vmem>>, vector<1x128xf32>
    %18 = vector.broadcast %17 : vector<1x128xf32> to vector<128x128xf32>
    %19 = arith.addf %16, %18 : vector<128x128xf32>
    %cst_17 = arith.constant 0.000000e+00 : f32
    %20 = vector.broadcast %cst_17 : f32 to vector<128x128xf32>
    %21 = arith.maximumf %19, %20 : vector<128x128xf32>
    %c0_18 = arith.constant 0 : index
    %c0_19 = arith.constant 0 : index
    %22 = vector.load %arg8[%c0_18, %c0_19] : memref<128x128xf32, #tpu.memory_space<vmem>>, vector<128x128xf32>
    %cst_20 = arith.constant dense<0.000000e+00> : vector<128x128xf32>
    %23 = tpu.matmul %21, %22, %cst_20 {dimension_numbers = #tpu.dot_dimension_numbers<[1], [0], [0], [1], [0, 0, 1, 1], [], []>} : vector<128x128xf32>, vector<128x128xf32>, vector<128x128xf32> -> vector<128x128xf32>
    %c0_21 = arith.constant 0 : index
    %c0_22 = arith.constant 0 : index
    %24 = vector.load %arg9[%c0_21, %c0_22] : memref<1x128xf32, #tpu.memory_space<vmem>>, vector<1x128xf32>
    %25 = vector.broadcast %24 : vector<1x128xf32> to vector<128x128xf32>
    %26 = arith.addf %23, %25 : vector<128x128xf32>
    %c0_23 = arith.constant 0 : index
    %c0_24 = arith.constant 0 : index
    %27 = vector.load %arg10[%c0_23, %c0_24] : memref<128x128xf32, #tpu.memory_space<vmem>>, vector<128x128xf32>
    tpu.vector_store %arg10[%c0_23, %c0_24], %26 {strides = array<i32>} : memref<128x128xf32, #tpu.memory_space<vmem>>, vector<128x128xf32>,
    return
  }
  func.func @transform_0(%arg0: i32) -> (i32, i32) {
    %c0_i32 = arith.constant 0 : i32
    %c0_i32_0 = arith.constant 0 : i32
    return %arg0, %c0_i32 : i32, i32
  }
  func.func @transform_1(%arg0: i32) -> (i32, i32) {
    %c0_i32 = arith.constant 0 : i32
    %c0_i32_0 = arith.constant 0 : i32
    %c0_i32_1 = arith.constant 0 : i32
    return %c0_i32, %c0_i32_0 : i32, i32
  }
  func.func @transform_2(%arg0: i32) -> (i32, i32) {
    %c0_i32 = arith.constant 0 : i32
    %c0_i32_0 = arith.constant 0 : i32
    %c0_i32_1 = arith.constant 0 : i32
    return %c0_i32, %c0_i32_0 : i32, i32
  }
  func.func @transform_3(%arg0: i32) -> (i32, i32) {
    %c0_i32 = arith.constant 0 : i32
    %c0_i32_0 = arith.constant 0 : i32
    %c0_i32_1 = arith.constant 0 : i32
    return %c0_i32, %c0_i32_0 : i32, i32
  }
  func.func @transform_4(%arg0: i32) -> (i32, i32) {
    %c0_i32 = arith.constant 0 : i32
    %c0_i32_0 = arith.constant 0 : i32
    %c0_i32_1 = arith.constant 0 : i32
    return %c0_i32, %c0_i32_0 : i32, i32
  }
  func.func @transform_5(%arg0: i32) -> (i32, i32) {
    %c0_i32 = arith.constant 0 : i32
    %c0_i32_0 = arith.constant 0 : i32
    %c0_i32_1 = arith.constant 0 : i32
    return %c0_i32, %c0_i32_0 : i32, i32
  }
  func.func @transform_6(%arg0: i32) -> (i32, i32) {
    %c0_i32 = arith.constant 0 : i32
    %c0_i32_0 = arith.constant 0 : i32
    %c0_i32_1 = arith.constant 0 : i32
    return %c0_i32, %c0_i32_0 : i32, i32
  }
  func.func @transform_7(%arg0: i32) -> (i32, i32) {
    %c0_i32 = arith.constant 0 : i32
    %c0_i32_0 = arith.constant 0 : i32
    %c0_i32_1 = arith.constant 0 : i32
    return %c0_i32, %c0_i32_0 : i32, i32
  }
  func.func @transform_8(%arg0: i32) -> (i32, i32) {
    %c0_i32 = arith.constant 0 : i32
    %c0_i32_0 = arith.constant 0 : i32
    %c0_i32_1 = arith.constant 0 : i32
    return %c0_i32, %c0_i32_0 : i32, i32
  }
  func.func @transform_9(%arg0: i32) -> (i32, i32) {
    %c0_i32 = arith.constant 0 : i32
    %c0_i32_0 = arith.constant 0 : i32
    return %arg0, %c0_i32 : i32, i32
  }
}

</mosaic_0001>

<bundles_post_ra>
// kernel: mlp_forward.1
= control target key start
LH: loop header
LB: loop body
LE: loop exit
PB: predicated region body
PF: predicated region fallthrough
CT: control target
= control target key end

     0   :  { %s1705_s30 = smov 0   ;;  %s1969_s0 = inlined_call_operand.vmem [shape: f32[256,128], index: 0, kind: input, shape index: {}]   ;;  %s1970_s1 = inlined_call_operand.vmem [shape: f32[128,128], index: 1, kind: input, shape index: {}]   ;;  %s1971_s2 = inlined_call_operand.vmem [shape: f32[1,128], index: 2, kind: input, shape index: {}]   ;;  %s1972_s3 = inlined_call_operand.vmem [shape: f32[128,128], index: 3, kind: input, shape index: {}]   ;;  %s1973_s4 = inlined_call_operand.vmem [shape: f32[1,128], index: 4, kind: input, shape index: {}]   ;;  %s1974_s5 = inlined_call_operand.vmem [shape: f32[128,128], index: 5, kind: input, shape index: {}]   ;;  %s1975_s6 = inlined_call_operand.vmem [shape: f32[1,128], index: 6, kind: input, shape index: {}]   ;;  %s1976_s7 = inlined_call_operand.vmem [shape: f32[128,128], index: 7, kind: input, shape index: {}]   ;;  %s1977_s8 = inlined_call_operand.vmem [shape: f32[1,128], index: 8, kind: input, shape index: {}]   ;;  %s1978_s9 = inlined_call_operand.vmem [shape: f32[256,128], index: 9, kind: output, shape index: {}]  }
   0x1 LB: > { %s1144_s10 = sadd.s32 4294967295, %s1653_s30   ;;  %p1148_p0 = scmp.ge.s32.totalorder %s1653_s30, 1  ;;  %s1653_s30 = sphi %s1705_s30, %s19_s30  }
   0x2   : > { %p288_p1 = scmp.lt.s32.totalorder %s1653_s30, 3 }
   0x4   : > { %p289_p2 = pnand %p1148_p0, %p288_p1 }
   0x5   : > { %v352_v0 = vld [vmem:[%s1970_s1] sm:$0xff] (!%p289_p2)  ;;  %v353_v1 = vld [vmem:[%s1970_s1 + $0x8] sm:$0xff] (!%p289_p2)  ;;  %v354_v2 = vld [vmem:[%s1970_s1 + $0x10] sm:$0xff] (!%p289_p2)  ;;  %s1149_s17 = sshll.u32 (!%p289_p2), %s1144_s10, 4 }
   0x6   : > { %292 = sbr.rel (%p289_p2) target bundleno = 938 (0x3aa), region = 56  ;;  %v1511_v3 = vpack.c.bf16 (!%p289_p2), %v353_v1, %v352_v0  ;;  %v355_v4 = vld [vmem:[%s1970_s1 + $0x18] sm:$0xff] (!%p289_p2)  ;;  %p325_p3 = scmp.lt.s32.totalorder (!%p289_p2), %s1149_s17, 31  ;;  %v356_v6 = vld [vmem:[%s1970_s1 + $0x20] sm:$0xff] (!%p289_p2)  ;;  %v357_v7 = vld [vmem:[%s1970_s1 + $0x28] sm:$0xff] (!%p289_p2) }
   0x7   : > { %v1515_v5 = vpack.c.bf16 (!%p289_p2), %v355_v4, %v354_v2  ;;  %v1519_v8 = vpack.c.bf16 (!%p289_p2), %v357_v7, %v356_v6  ;;  %v358_v9 = vld [vmem:[%s1970_s1 + $0x30] sm:$0xff] (!%p289_p2)  ;;  %v536_v10 = vld [vmem:[%s1972_s3] sm:$0xff] (!%p289_p2)  ;;  %v537_v11 = vld [vmem:[%s1972_s3 + $0x8] sm:$0xff] (!%p289_p2) }
   0x8   : > { %1512 = vmatprep.subr.bf16.mxu0 (!%p289_p2), %v1511_v3  ;;  %v359_v12 = vld [vmem:[%s1970_s1 + $0x38] sm:$0xff] (!%p289_p2)  ;;  %v1543_v13 = vpack.c.bf16 (!%p289_p2), %v537_v11, %v536_v10  ;;  %v538_v14 = vld [vmem:[%s1972_s3 + $0x10] sm:$0xff] (!%p289_p2)  ;;  %v360_v19 = vld [vmem:[%s1970_s1 + $0x40] sm:$0xff] (!%p289_p2) }
   0x9   : > { %1514 = vmatpush3.bf16.msra.mxu0 (!%p289_p2), %v1511_v3  ;;  %v539_v15 = vld [vmem:[%s1972_s3 + $0x18] sm:$0xff] (!%p289_p2)  ;;  %v1523_v18 = vpack.c.bf16 (!%p289_p2), %v359_v12, %v358_v9  ;;  %v361_v20 = vld [vmem:[%s1970_s1 + $0x48] sm:$0xff] (!%p289_p2)  ;;  %v540_v21 = vld [vmem:[%s1972_s3 + $0x20] sm:$0xff] (!%p289_p2) }
   0xa   : > { %1516 = vmatprep.subr.bf16.mxu0 (!%p289_p2), %v1515_v5  ;;  %v1547_v17 = vpack.c.bf16 (!%p289_p2), %v539_v15, %v538_v14  ;;  %1544 = vmatprep.subr.bf16.mxu1 (!%p289_p2), %v1543_v13  ;;  %v541_v22 = vld [vmem:[%s1972_s3 + $0x28] sm:$0xff] (!%p289_p2)  ;;  %v542_v23 = vld [vmem:[%s1972_s3 + $0x30] sm:$0xff] (!%p289_p2)  ;;  %v1527_v24 = vpack.c.bf16 (!%p289_p2), %v361_v20, %v360_v19  ;;  %v543_v26 = vld [vmem:[%s1972_s3 + $0x38] sm:$0xff] (!%p289_p2) }
   0xb   : > { %1546 = vmatpush3.bf16.msra.mxu1 (!%p289_p2), %v1543_v13  ;;  %v1551_v25 = vpack.c.bf16 (!%p289_p2), %v541_v22, %v540_v21  ;;  %v362_v27 = vld [vmem:[%s1970_s1 + $0x50] sm:$0xff] (!%p289_p2)  ;;  %v363_v28 = vld [vmem:[%s1970_s1 + $0x58] sm:$0xff] (!%p289_p2)  ;;  %v1555_v29 = vpack.c.bf16 (!%p289_p2), %v543_v26, %v542_v23  ;;  %v544_v30 = vld [vmem:[%s1972_s3 + $0x40] sm:$0xff] (!%p289_p2) }
   0xc   : > { %1548 = vmatprep.subr.bf16.mxu1 (!%p289_p2), %v1547_v17  ;;  %v545_v31 = vld [vmem:[%s1972_s3 + $0x48] sm:$0xff] (!%p289_p2)  ;;  %v1531_v32 = vpack.c.bf16 (!%p289_p2), %v363_v28, %v362_v27  ;;  %v364_v33 = vld [vmem:[%s1970_s1 + $0x60] sm:$0xff] (!%p289_p2)  ;;  %v546_v36 = vld [vmem:[%s1972_s3 + $0x50] sm:$0xff] (!%p289_p2) }
   0xd   : > { %s1980_s17 = smov (!%p325_p3, %s1149_s17), 31  ;;  %1518 = vmatpush3.bf16.msra.mxu0 %v1515_v5  ;;  %v365_v34 = vld [vmem:[%s1970_s1 + $0x68] sm:$0xff]  ;;  %v1559_v35 = vpack.c.bf16 %v545_v31, %v544_v30  ;;  %v547_v37 = vld [vmem:[%s1972_s3 + $0x58] sm:$0xff]  ;;  %v366_v39 = vld [vmem:[%s1970_s1 + $0x70] sm:$0xff] }
   0xe   : > { %s1150_s26 = sshll.u32 %s1980_s17, 3  ;;  %1520 = vmatprep.subr.bf16.mxu0 %v1519_v8  ;;  %v1535_v38 = vpack.c.bf16 %v365_v34, %v364_v33  ;;  %v367_v40 = vld [vmem:[%s1970_s1 + $0x78] sm:$0xff]  ;;  %v1563_v41 = vpack.c.bf16 %v547_v37, %v546_v36  ;;  %v548_v42 = vld [vmem:[%s1972_s3 + $0x60] sm:$0xff]  ;;  %v549_v43 = vld [vmem:[%s1972_s3 + $0x68] sm:$0xff] }
   0xf   : > { %s1751_s15 = scalar_lea.vmem %s1969_s0, %s1150_s26  ;;  %1550 = vmatpush3.bf16.msra.mxu1 %v1547_v17  ;;  %v1539_v44 = vpack.c.bf16 %v367_v40, %v366_v39  ;;  %v1567_v45 = vpack.c.bf16 %v549_v43, %v548_v42  ;;  %v550_v61 = vld [vmem:[%s1972_s3 + $0x70] sm:$0xff]  ;;  %v551_v62 = vld [vmem:[%s1972_s3 + $0x78] sm:$0xff]  ;;  %v720_v0 = vld [vmem:[%s1974_s5] sm:$0xff]  ;;  %s1948_s10 = scalar_lea.vmem %s1978_s9, %s1150_s26 }
  0x10   : > { %v336_v16 = vld [vmem:[%s1751_s15] sm:$0xff]  ;;  %1552 = vmatprep.subr.bf16.mxu1 %v1551_v25  ;;  %v337_v46 = vld [vmem:[%s1751_s15 + $0x8] sm:$0xff]  ;;  %v338_v47 = vld [vmem:[%s1751_s15 + $0x10] sm:$0xff]  ;;  %v1571_v63 = vpack.c.bf16 %v551_v62, %v550_v61 }
  0x11   : > { %1319 = vmatprep.mubr.f32.mxu0 %v336_v16  ;;  %1522 = vmatpush3.bf16.msra.mxu0 %v1519_v8  ;;  %v339_v48 = vld [vmem:[%s1751_s15 + $0x18] sm:$0xff]  ;;  %v340_v49 = vld [vmem:[%s1751_s15 + $0x20] sm:$0xff]  ;;  %v341_v50 = vld [vmem:[%s1751_s15 + $0x28] sm:$0xff] }
  0x12   : > { %1524 = vmatprep.subr.bf16.mxu0 %v1523_v18  ;;  %v342_v51 = vld [vmem:[%s1751_s15 + $0x30] sm:$0xff]  ;;  %v343_v52 = vld [vmem:[%s1751_s15 + $0x38] sm:$0xff]  ;;  %v344_v53 = vld [vmem:[%s1751_s15 + $0x40] sm:$0xff] }
  0x13   : > { %1554 = vmatpush3.bf16.msra.mxu1 %v1551_v25  ;;  %v345_v54 = vld [vmem:[%s1751_s15 + $0x48] sm:$0xff]  ;;  %v346_v55 = vld [vmem:[%s1751_s15 + $0x50] sm:$0xff]  ;;  %v347_v56 = vld [vmem:[%s1751_s15 + $0x58] sm:$0xff] }
  0x14   : > { %1556 = vmatprep.subr.bf16.mxu1 %v1555_v29  ;;  %v348_v57 = vld [vmem:[%s1751_s15 + $0x60] sm:$0xff]  ;;  %v349_v58 = vld [vmem:[%s1751_s15 + $0x68] sm:$0xff]  ;;  %v350_v59 = vld [vmem:[%s1751_s15 + $0x70] sm:$0xff] }
  0x15   : > { %1526 = vmatpush3.bf16.msra.mxu0 %v1523_v18  ;;  %v351_v60 = vld [vmem:[%s1751_s15 + $0x78] sm:$0xff]  ;;  %v721_v1 = vld [vmem:[%s1974_s5 + $0x8] sm:$0xff]  ;;  %v722_v2 = vld [vmem:[%s1974_s5 + $0x10] sm:$0xff] }
  0x16   : > { %1528 = vmatprep.subr.bf16.mxu0 %v1527_v24  ;;  %v1575_v3 = vpack.c.bf16 %v721_v1, %v720_v0  ;;  %v723_v4 = vld [vmem:[%s1974_s5 + $0x18] sm:$0xff]  ;;  %v724_v6 = vld [vmem:[%s1974_s5 + $0x20] sm:$0xff]  ;;  %v725_v7 = vld [vmem:[%s1974_s5 + $0x28] sm:$0xff] }
  0x17   : > { %1558 = vmatpush3.bf16.msra.mxu1 %v1555_v29  ;;  %v1579_v5 = vpack.c.bf16 %v723_v4, %v722_v2  ;;  %v1583_v8 = vpack.c.bf16 %v725_v7, %v724_v6  ;;  %v726_v9 = vld [vmem:[%s1974_s5 + $0x30] sm:$0xff]  ;;  %v727_v10 = vld [vmem:[%s1974_s5 + $0x38] sm:$0xff]  ;;  %v728_v12 = vld [vmem:[%s1974_s5 + $0x40] sm:$0xff] }
  0x18   : > { %1560 = vmatprep.subr.bf16.mxu1 %v1559_v35  ;;  %v1587_v11 = vpack.c.bf16 %v727_v10, %v726_v9  ;;  %v729_v13 = vld [vmem:[%s1974_s5 + $0x48] sm:$0xff]  ;;  %v730_v15 = vld [vmem:[%s1974_s5 + $0x50] sm:$0xff]  ;;  %v731_v16 = vld [vmem:[%s1974_s5 + $0x58] sm:$0xff] }
  0x19   : > { %1530 = vmatpush3.bf16.msra.mxu0 %v1527_v24  ;;  %v1591_v14 = vpack.c.bf16 %v729_v13, %v728_v12  ;;  %v1595_v17 = vpack.c.bf16 %v731_v16, %v730_v15  ;;  %v732_v18 = vld [vmem:[%s1974_s5 + $0x60] sm:$0xff]  ;;  %v733_v19 = vld [vmem:[%s1974_s5 + $0x68] sm:$0xff]  ;;  %v734_v6 = vld [vmem:[%s1974_s5 + $0x70] sm:$0xff] }
  0x1a   : > { %1532 = vmatprep.subr.bf16.mxu0 %v1531_v32  ;;  %v1599_v20 = vpack.c.bf16 %v733_v19, %v732_v18  ;;  %v1153_v21 = vld [vmem:[%s1971_s2] ss:$0 sm:$0xff]  ;;  %v735_v7 = vld [vmem:[%s1974_s5 + $0x78] sm:$0xff]  ;;  %v905_v10 = vld [vmem:[%s1976_s7 + $0x8] sm:$0xff] }
  0x1b   : > { %1562 = vmatpush3.bf16.msra.mxu1 %v1559_v35  ;;  %v904_v9 = vld [vmem:[%s1976_s7] sm:$0xff]  ;;  %v907_v13 = vld [vmem:[%s1976_s7 + $0x18] sm:$0xff]  ;;  %v909_v16 = vld [vmem:[%s1976_s7 + $0x28] sm:$0xff] }
  0x1c   : > { %1564 = vmatprep.subr.bf16.mxu1 %v1563_v41  ;;  %v1607_v12 = vpack.c.bf16 %v905_v10, %v904_v9  ;;  %v908_v15 = vld [vmem:[%s1976_s7 + $0x20] sm:$0xff]  ;;  %v910_v18 = vld [vmem:[%s1976_s7 + $0x30] sm:$0xff]  ;;  %v911_v19 = vld [vmem:[%s1976_s7 + $0x38] sm:$0xff] }
  0x1d   : > { %1534 = vmatpush3.bf16.msra.mxu0 %v1531_v32 }
  0x1e   : > { %1536 = vmatprep.subr.bf16.mxu0 %v1535_v38 }
  0x1f   : > { %1566 = vmatpush3.bf16.msra.mxu1 %v1563_v41 }
  0x20   : > { %1568 = vmatprep.subr.bf16.mxu1 %v1567_v45 }
  0x21   : > { %1538 = vmatpush3.bf16.msra.mxu0 %v1535_v38 }
  0x22   : > { %1540 = vmatprep.subr.bf16.mxu0 %v1539_v44 }
  0x23   : > { %1570 = vmatpush3.bf16.msra.mxu1 %v1567_v45 }
  0x24   : > { %1572 = vmatprep.subr.bf16.mxu1 %v1571_v63 }
  0x25   : > { %1542 = vmatpush3.bf16.msra.mxu0 %v1539_v44 }
  0x26   : > { %1576 = vmatprep.subr.bf16.mxu0 %v1575_v3 }
  0x27   : > { %1574 = vmatpush3.bf16.msra.mxu1 %v1571_v63 }
  0x28   : > { %1320 = vmatmul.mubr.f32.vlgmr.msra.gmra.mrb[0].mxu0 %v337_v46  ;;  %1608 = vmatprep.subr.bf16.mxu1 %v1607_v12 }
  0x29   : > { %1322 = vmatprep.mubr.f32.mxu0 %v338_v47  ;;  %1578 = vmatpush3.bf16.msra.mxu0 %v1575_v3 }
  0x2a   : > { %1580 = vmatprep.subr.bf16.mxu0 %v1579_v5 }
  0x2c   : > { %1323 = vmatmul.mubr.f32.gmra.mrb[2].mxu0 %v339_v48 }
  0x2d   : > { %1325 = vmatprep.mubr.f32.mxu0 %v340_v49  ;;  %1582 = vmatpush3.bf16.msra.mxu0 %v1579_v5 }
  0x2e   : > { %1584 = vmatprep.subr.bf16.mxu0 %v1583_v8 }
  0x30   : > { %1326 = vmatmul.mubr.f32.gmra.mrb[4].mxu0 %v341_v50 }
  0x31   : > { %1328 = vmatprep.mubr.f32.mxu0 %v342_v51  ;;  %1586 = vmatpush3.bf16.msra.mxu0 %v1583_v8  ;;  %v1603_v8 = vpack.c.bf16 %v735_v7, %v734_v6 }
  0x32   : > { %1588 = vmatprep.subr.bf16.mxu0 %v1587_v11 }
  0x34   : > { %1329 = vmatmul.mubr.f32.gmra.mrb[6].mxu0 %v343_v52 }
  0x35   : > { %1331 = vmatprep.mubr.f32.mxu0 %v344_v53  ;;  %1590 = vmatpush3.bf16.msra.mxu0 %v1587_v11  ;;  %v906_v11 = vld [vmem:[%s1976_s7 + $0x10] sm:$0xff] }
  0x36   : > { %1592 = vmatprep.subr.bf16.mxu0 %v1591_v14 }
  0x38   : > { %1332 = vmatmul.mubr.f32.gmra.mrb[8].mxu0 %v345_v54 }
  0x39   : > { %1334 = vmatprep.mubr.f32.mxu0 %v346_v55  ;;  %1594 = vmatpush3.bf16.msra.mxu0 %v1591_v14  ;;  %v1611_v14 = vpack.c.bf16 %v907_v13, %v906_v11 }
  0x3a   : > { %1596 = vmatprep.subr.bf16.mxu0 %v1595_v17 }
  0x3c   : > { %1335 = vmatmul.mubr.f32.gmra.mrb[10].mxu0 %v347_v56 }
  0x3d   : > { %1337 = vmatprep.mubr.f32.mxu0 %v348_v57  ;;  %1598 = vmatpush3.bf16.msra.mxu0 %v1595_v17  ;;  %v1615_v17 = vpack.c.bf16 %v909_v16, %v908_v15  ;;  %v918_v15 = vld [vmem:[%s1976_s7 + $0x70] sm:$0xff]  ;;  %v919_v16 = vld [vmem:[%s1976_s7 + $0x78] sm:$0xff] }
  0x3e   : > { %1600 = vmatprep.subr.bf16.mxu0 %v1599_v20 }
  0x40   : > { %1338 = vmatmul.mubr.f32.gmra.mrb[12].mxu0 %v349_v58 }
  0x41   : > { %1340 = vmatprep.mubr.f32.mxu0 %v350_v59  ;;  %1602 = vmatpush3.bf16.msra.mxu0 %v1599_v20  ;;  %v1619_v20 = vpack.c.bf16 %v911_v19, %v910_v18  ;;  %v1155_v18 = vld [vmem:[%s1975_s6] ss:$0 sm:$0xff] }
  0x42   : > { %1604 = vmatprep.subr.bf16.mxu0 %v1603_v8 }
  0x44   : > { %1341 = vmatmul.mubr.f32.gmra.mrb[14].mxu0 %v351_v60 }
  0x45   : > { %1606 = vmatpush3.bf16.msra.mxu0 %v1603_v8 }
  0xfb   : > { %v1321_v22 = vpop.f32.mrb[0].mxu0 }
  0xfc   : > { %v447_v23 = vadd.f32 %v1321_v22, %v1153_v21  ;;  %v441_v24 = vpop.f32.mrb[1].mxu0  ;;  %v913_v22 = vld [vmem:[%s1976_s7 + $0x48] sm:$0xff] }
  0xfd   : > { %v442_v25 = vadd.f32 %v1153_v21, %v441_v24  ;;  %v914_v24 = vld [vmem:[%s1976_s7 + $0x50] sm:$0xff] }
  0xfe   : > { %v521_v28 = vmax.f32 %v447_v23, 0.0 }
  0xff   : > { %v1324_v26 = vpop.f32.mrb[2].mxu0  ;;  %v520_v27 = vmax.f32 %v442_v25, 0.0  ;;  %v915_v25 = vld [vmem:[%s1976_s7 + $0x58] sm:$0xff] }
 0x100   : > { %v457_v29 = vadd.f32 %v1324_v26, %v1153_v21  ;;  %v451_v30 = vpop.f32.mrb[3].mxu0  ;;  %v1627_v26 = vpack.c.bf16 %v915_v25, %v914_v24 }
 0x101   : > { %v452_v31 = vadd.f32 %v1153_v21, %v451_v30  ;;  %1375 = vmatprep.mubr.f32.mxu1 %v520_v27  ;;  %v916_v27 = vld [vmem:[%s1976_s7 + $0x60] sm:$0xff] }
 0x102   : > { %1376 = vmatmul.mubr.f32.vlgmr.msra.gmra.mrb[0].mxu1 %v521_v28  ;;  %v523_v34 = vmax.f32 %v457_v29, 0.0  ;;  %v917_v28 = vld [vmem:[%s1976_s7 + $0x68] sm:$0xff]  ;;  %v1154_v30 = vld [vmem:[%s1973_s4] ss:$0 sm:$0xff] }
 0x103   : > { %v522_v32 = vmax.f32 %v452_v31, 0.0  ;;  %v1327_v33 = vpop.f32.mrb[4].mxu0  ;;  %1610 = vmatpush3.bf16.msra.mxu1 %v1607_v12  ;;  %v1631_v29 = vpack.c.bf16 %v917_v28, %v916_v27 }
 0x104   : > { %v467_v35 = vadd.f32 %v1327_v33, %v1153_v21  ;;  %v461_v36 = vpop.f32.mrb[5].mxu0  ;;  %1612 = vmatprep.subr.bf16.mxu1 %v1611_v14 }
 0x105   : > { %v462_v37 = vadd.f32 %v1153_v21, %v461_v36  ;;  %1378 = vmatprep.mubr.f32.mxu1 %v522_v32 }
 0x106   : > { %1379 = vmatmul.mubr.f32.gmra.mrb[2].mxu1 %v523_v34  ;;  %v525_v40 = vmax.f32 %v467_v35, 0.0 }
 0x107   : > { %v524_v38 = vmax.f32 %v462_v37, 0.0  ;;  %v1330_v39 = vpop.f32.mrb[6].mxu0  ;;  %1614 = vmatpush3.bf16.msra.mxu1 %v1611_v14 }
 0x108   : > { %v477_v41 = vadd.f32 %v1330_v39, %v1153_v21  ;;  %v471_v42 = vpop.f32.mrb[7].mxu0  ;;  %1616 = vmatprep.subr.bf16.mxu1 %v1615_v17 }
 0x109   : > { %v472_v43 = vadd.f32 %v1153_v21, %v471_v42  ;;  %1381 = vmatprep.mubr.f32.mxu1 %v524_v38 }
 0x10a   : > { %1382 = vmatmul.mubr.f32.gmra.mrb[4].mxu1 %v525_v40  ;;  %v527_v46 = vmax.f32 %v477_v41, 0.0 }
 0x10b   : > { %v526_v44 = vmax.f32 %v472_v43, 0.0  ;;  %v1333_v45 = vpop.f32.mrb[8].mxu0  ;;  %1618 = vmatpush3.bf16.msra.mxu1 %v1615_v17  ;;  %v1635_v17 = vpack.c.bf16 %v919_v16, %v918_v15 }
 0x10c   : > { %v487_v47 = vadd.f32 %v1333_v45, %v1153_v21  ;;  %v481_v48 = vpop.f32.mrb[9].mxu0  ;;  %1620 = vmatprep.subr.bf16.mxu1 %v1619_v20 }
 0x10d   : > { %v482_v49 = vadd.f32 %v1153_v21, %v481_v48  ;;  %1384 = vmatprep.mubr.f32.mxu1 %v526_v44 }
 0x10e   : > { %1385 = vmatmul.mubr.f32.gmra.mrb[6].mxu1 %v527_v46  ;;  %v529_v52 = vmax.f32 %v487_v47, 0.0 }
 0x10f   : > { %v528_v50 = vmax.f32 %v482_v49, 0.0  ;;  %v1336_v51 = vpop.f32.mrb[10].mxu0  ;;  %1622 = vmatpush3.bf16.msra.mxu1 %v1619_v20 }
 0x110   : > { %v497_v53 = vadd.f32 %v1336_v51, %v1153_v21  ;;  %v491_v54 = vpop.f32.mrb[11].mxu0 }
 0x111   : > { %v492_v55 = vadd.f32 %v1153_v21, %v491_v54  ;;  %1387 = vmatprep.mubr.f32.mxu1 %v528_v50 }
 0x112   : > { %1388 = vmatmul.mubr.f32.gmra.mrb[8].mxu1 %v529_v52  ;;  %v531_v58 = vmax.f32 %v497_v53, 0.0 }
 0x113   : > { %v530_v56 = vmax.f32 %v492_v55, 0.0  ;;  %v1339_v57 = vpop.f32.mrb[12].mxu0 }
 0x114   : > { %v507_v59 = vadd.f32 %v1339_v57, %v1153_v21  ;;  %v501_v60 = vpop.f32.mrb[13].mxu0 }
 0x115   : > { %v502_v61 = vadd.f32 %v1153_v21, %v501_v60  ;;  %1390 = vmatprep.mubr.f32.mxu1 %v530_v56 }
 0x116   : > { %1391 = vmatmul.mubr.f32.gmra.mrb[10].mxu1 %v531_v58  ;;  %v533_v0 = vmax.f32 %v507_v59, 0.0 }
 0x117   : > { %v532_v62 = vmax.f32 %v502_v61, 0.0  ;;  %v1342_v63 = vpop.f32.mrb[14].mxu0 }
 0x118   : > { %v517_v1 = vadd.f32 %v1342_v63, %v1153_v21  ;;  %v511_v2 = vpop.f32.mrb[15].mxu0 }
 0x119   : > { %v512_v3 = vadd.f32 %v1153_v21, %v511_v2  ;;  %1393 = vmatprep.mubr.f32.mxu1 %v532_v62  ;;  %v912_v21 = vld [vmem:[%s1976_s7 + $0x40] sm:$0xff] }
 0x11a   : > { %1394 = vmatmul.mubr.f32.gmra.mrb[12].mxu1 %v533_v0  ;;  %v535_v5 = vmax.f32 %v517_v1, 0.0  ;;  %v1623_v23 = vpack.c.bf16 %v913_v22, %v912_v21 }
 0x11b   : > { %v534_v4 = vmax.f32 %v512_v3, 0.0 }
 0x11c   : > { %1624 = vmatprep.subr.bf16.mxu1 %v1623_v23 }
 0x11d   : > { %1396 = vmatprep.mubr.f32.mxu1 %v534_v4  ;;  %1626 = vmatpush3.bf16.msra.mxu1 %v1623_v23 }
 0x11e   : > { %1397 = vmatmul.mubr.f32.gmra.mrb[14].mxu1 %v535_v5  ;;  %1628 = vmatprep.subr.bf16.mxu1 %v1627_v26 }
 0x121   : > { %1630 = vmatpush3.bf16.msra.mxu1 %v1627_v26 }
 0x122   : > { %1632 = vmatprep.subr.bf16.mxu1 %v1631_v29 }
 0x125   : > { %1634 = vmatpush3.bf16.msra.mxu1 %v1631_v29 }
 0x126   : > { %1636 = vmatprep.subr.bf16.mxu1 %v1635_v17 }
 0x129   : > { %1638 = vmatpush3.bf16.msra.mxu1 %v1635_v17 }
 0x1d5   : > { %v1377_v31 = vpop.f32.mrb[0].mxu1 }
 0x1d6   : > { %v631_v32 = vadd.f32 %v1377_v31, %v1154_v30  ;;  %v625_v33 = vpop.f32.mrb[1].mxu1 }
 0x1d7   : > { %v626_v34 = vadd.f32 %v1154_v30, %v625_v33 }
 0x1d8   : > { %v705_v37 = vmax.f32 %v631_v32, 0.0 }
 0x1d9   : > { %v704_v35 = vmax.f32 %v626_v34, 0.0  ;;  %v1380_v36 = vpop.f32.mrb[2].mxu1 }
 0x1da   : > { %v641_v38 = vadd.f32 %v1380_v36, %v1154_v30  ;;  %v635_v39 = vpop.f32.mrb[3].mxu1 }
 0x1db   : > { %v636_v40 = vadd.f32 %v1154_v30, %v635_v39  ;;  %1431 = vmatprep.mubr.f32.mxu0 %v704_v35 }
 0x1dc   : > { %1432 = vmatmul.mubr.f32.vlgmr.msra.gmra.mrb[16].mxu0 %v705_v37  ;;  %v707_v43 = vmax.f32 %v641_v38, 0.0 }
 0x1dd   : > { %v706_v41 = vmax.f32 %v636_v40, 0.0  ;;  %v1383_v42 = vpop.f32.mrb[4].mxu1 }
 0x1de   : > { %v651_v44 = vadd.f32 %v1383_v42, %v1154_v30  ;;  %v645_v45 = vpop.f32.mrb[5].mxu1 }
 0x1df   : > { %v646_v46 = vadd.f32 %v1154_v30, %v645_v45  ;;  %1434 = vmatprep.mubr.f32.mxu0 %v706_v41 }
 0x1e0   : > { %1435 = vmatmul.mubr.f32.gmra.mrb[18].mxu0 %v707_v43  ;;  %v709_v49 = vmax.f32 %v651_v44, 0.0 }
 0x1e1   : > { %v708_v47 = vmax.f32 %v646_v46, 0.0  ;;  %v1386_v48 = vpop.f32.mrb[6].mxu1 }
 0x1e2   : > { %v661_v50 = vadd.f32 %v1386_v48, %v1154_v30  ;;  %v655_v51 = vpop.f32.mrb[7].mxu1 }
 0x1e3   : > { %v656_v52 = vadd.f32 %v1154_v30, %v655_v51  ;;  %1437 = vmatprep.mubr.f32.mxu0 %v708_v47 }
 0x1e4   : > { %1438 = vmatmul.mubr.f32.gmra.mrb[20].mxu0 %v709_v49  ;;  %v711_v55 = vmax.f32 %v661_v50, 0.0 }
 0x1e5   : > { %v710_v53 = vmax.f32 %v656_v52, 0.0  ;;  %v1389_v54 = vpop.f32.mrb[8].mxu1 }
 0x1e6   : > { %v671_v56 = vadd.f32 %v1389_v54, %v1154_v30  ;;  %v665_v57 = vpop.f32.mrb[9].mxu1 }
 0x1e7   : > { %v666_v58 = vadd.f32 %v1154_v30, %v665_v57  ;;  %1440 = vmatprep.mubr.f32.mxu0 %v710_v53 }
 0x1e8   : > { %1441 = vmatmul.mubr.f32.gmra.mrb[22].mxu0 %v711_v55  ;;  %v713_v61 = vmax.f32 %v671_v56, 0.0 }
 0x1e9   : > { %v712_v59 = vmax.f32 %v666_v58, 0.0  ;;  %v1392_v60 = vpop.f32.mrb[10].mxu1 }
 0x1ea   : > { %v681_v62 = vadd.f32 %v1392_v60, %v1154_v30  ;;  %v675_v63 = vpop.f32.mrb[11].mxu1 }
 0x1eb   : > { %v676_v0 = vadd.f32 %v1154_v30, %v675_v63  ;;  %1443 = vmatprep.mubr.f32.mxu0 %v712_v59 }
 0x1ec   : > { %1444 = vmatmul.mubr.f32.gmra.mrb[24].mxu0 %v713_v61  ;;  %v715_v3 = vmax.f32 %v681_v62, 0.0 }
 0x1ed   : > { %v714_v1 = vmax.f32 %v676_v0, 0.0  ;;  %v1395_v2 = vpop.f32.mrb[12].mxu1 }
 0x1ee   : > { %v691_v4 = vadd.f32 %v1395_v2, %v1154_v30  ;;  %v685_v5 = vpop.f32.mrb[13].mxu1 }
 0x1ef   : > { %v686_v6 = vadd.f32 %v1154_v30, %v685_v5  ;;  %1446 = vmatprep.mubr.f32.mxu0 %v714_v1 }
 0x1f0   : > { %1447 = vmatmul.mubr.f32.gmra.mrb[26].mxu0 %v715_v3  ;;  %v717_v9 = vmax.f32 %v691_v4, 0.0  ;;  %v1156_v3 = vld [vmem:[%s1977_s8] ss:$0 sm:$0xff] }
 0x1f1   : > { %v716_v7 = vmax.f32 %v686_v6, 0.0  ;;  %v1398_v8 = vpop.f32.mrb[14].mxu1 }
 0x1f2   : > { %v701_v10 = vadd.f32 %v1398_v8, %v1154_v30  ;;  %v695_v11 = vpop.f32.mrb[15].mxu1 }
 0x1f3   : > { %v696_v12 = vadd.f32 %v1154_v30, %v695_v11  ;;  %1449 = vmatprep.mubr.f32.mxu0 %v716_v7 }
 0x1f4   : > { %1450 = vmatmul.mubr.f32.gmra.mrb[28].mxu0 %v717_v9  ;;  %v719_v14 = vmax.f32 %v701_v10, 0.0 }
 0x1f5   : > { %v718_v13 = vmax.f32 %v696_v12, 0.0 }
 0x1f7   : > { %1452 = vmatprep.mubr.f32.mxu0 %v718_v13 }
 0x1f8   : > { %1453 = vmatmul.mubr.f32.gmra.mrb[30].mxu0 %v719_v14 }
 0x2af   : > { %v1433_v19 = vpop.f32.mrb[16].mxu0 }
 0x2b0   : > { %v815_v20 = vadd.f32 %v1433_v19, %v1155_v18  ;;  %v809_v21 = vpop.f32.mrb[17].mxu0 }
 0x2b1   : > { %v810_v22 = vadd.f32 %v1155_v18, %v809_v21 }
 0x2b2   : > { %v889_v25 = vmax.f32 %v815_v20, 0.0 }
 0x2b3   : > { %v888_v23 = vmax.f32 %v810_v22, 0.0  ;;  %v1436_v24 = vpop.f32.mrb[18].mxu0 }
 0x2b4   : > { %v825_v26 = vadd.f32 %v1436_v24, %v1155_v18  ;;  %v819_v27 = vpop.f32.mrb[19].mxu0 }
 0x2b5   : > { %v820_v28 = vadd.f32 %v1155_v18, %v819_v27  ;;  %1487 = vmatprep.mubr.f32.mxu1 %v888_v23 }
 0x2b6   : > { %1488 = vmatmul.mubr.f32.vlgmr.msra.gmra.mrb[16].mxu1 %v889_v25  ;;  %v891_v31 = vmax.f32 %v825_v26, 0.0 }
 0x2b7   : > { %v890_v29 = vmax.f32 %v820_v28, 0.0  ;;  %v1439_v30 = vpop.f32.mrb[20].mxu0 }
 0x2b8   : > { %v835_v32 = vadd.f32 %v1439_v30, %v1155_v18  ;;  %v829_v33 = vpop.f32.mrb[21].mxu0 }
 0x2b9   : > { %v830_v34 = vadd.f32 %v1155_v18, %v829_v33  ;;  %1490 = vmatprep.mubr.f32.mxu1 %v890_v29 }
 0x2ba   : > { %1491 = vmatmul.mubr.f32.gmra.mrb[18].mxu1 %v891_v31  ;;  %v893_v37 = vmax.f32 %v835_v32, 0.0 }
 0x2bb   : > { %v892_v35 = vmax.f32 %v830_v34, 0.0  ;;  %v1442_v36 = vpop.f32.mrb[22].mxu0 }
 0x2bc   : > { %v845_v38 = vadd.f32 %v1442_v36, %v1155_v18  ;;  %v839_v39 = vpop.f32.mrb[23].mxu0 }
 0x2bd   : > { %v840_v40 = vadd.f32 %v1155_v18, %v839_v39  ;;  %1493 = vmatprep.mubr.f32.mxu1 %v892_v35 }
 0x2be   : > { %1494 = vmatmul.mubr.f32.gmra.mrb[20].mxu1 %v893_v37  ;;  %v895_v43 = vmax.f32 %v845_v38, 0.0 }
 0x2bf   : > { %v894_v41 = vmax.f32 %v840_v40, 0.0  ;;  %v1445_v42 = vpop.f32.mrb[24].mxu0 }
 0x2c0   : > { %v855_v44 = vadd.f32 %v1445_v42, %v1155_v18  ;;  %v849_v45 = vpop.f32.mrb[25].mxu0 }
 0x2c1   : > { %v850_v46 = vadd.f32 %v1155_v18, %v849_v45  ;;  %1496 = vmatprep.mubr.f32.mxu1 %v894_v41 }
 0x2c2   : > { %1497 = vmatmul.mubr.f32.gmra.mrb[22].mxu1 %v895_v43  ;;  %v897_v49 = vmax.f32 %v855_v44, 0.0 }
 0x2c3   : > { %v896_v47 = vmax.f32 %v850_v46, 0.0  ;;  %v1448_v48 = vpop.f32.mrb[26].mxu0 }
 0x2c4   : > { %v865_v50 = vadd.f32 %v1448_v48, %v1155_v18  ;;  %v859_v51 = vpop.f32.mrb[27].mxu0 }
 0x2c5   : > { %v860_v52 = vadd.f32 %v1155_v18, %v859_v51  ;;  %1499 = vmatprep.mubr.f32.mxu1 %v896_v47 }
 0x2c6   : > { %1500 = vmatmul.mubr.f32.gmra.mrb[24].mxu1 %v897_v49  ;;  %v899_v55 = vmax.f32 %v865_v50, 0.0 }
 0x2c7   : > { %v898_v53 = vmax.f32 %v860_v52, 0.0  ;;  %v1451_v54 = vpop.f32.mrb[28].mxu0 }
 0x2c8   : > { %v875_v56 = vadd.f32 %v1451_v54, %v1155_v18  ;;  %v869_v57 = vpop.f32.mrb[29].mxu0 }
 0x2c9   : > { %v870_v58 = vadd.f32 %v1155_v18, %v869_v57  ;;  %1502 = vmatprep.mubr.f32.mxu1 %v898_v53 }
 0x2ca   : > { %1503 = vmatmul.mubr.f32.gmra.mrb[26].mxu1 %v899_v55  ;;  %v901_v61 = vmax.f32 %v875_v56, 0.0 }
 0x2cb   : > { %v900_v59 = vmax.f32 %v870_v58, 0.0  ;;  %v1454_v60 = vpop.f32.mrb[30].mxu0 }
 0x2cc   : > { %v885_v62 = vadd.f32 %v1454_v60, %v1155_v18  ;;  %v879_v63 = vpop.f32.mrb[31].mxu0 }
 0x2cd   : > { %v880_v0 = vadd.f32 %v1155_v18, %v879_v63  ;;  %1505 = vmatprep.mubr.f32.mxu1 %v900_v59 }
 0x2ce   : > { %1506 = vmatmul.mubr.f32.gmra.mrb[28].mxu1 %v901_v61  ;;  %v903_v2 = vmax.f32 %v885_v62, 0.0 }
 0x2cf   : > { %v902_v1 = vmax.f32 %v880_v0, 0.0 }
 0x2d1   : > { %1508 = vmatprep.mubr.f32.mxu1 %v902_v1 }
 0x2d2   : > { %1509 = vmatmul.mubr.f32.gmra.mrb[30].mxu1 %v903_v2 }
 0x389   : > { %v1489_v4 = vpop.f32.mrb[16].mxu1 }
 0x38a   : > { %v999_v5 = vadd.f32 %v1489_v4, %v1156_v3  ;;  %v993_v6 = vpop.f32.mrb[17].mxu1 }
 0x38b   : > { %v994_v7 = vadd.f32 %v1156_v3, %v993_v6 }
 0x38c   : > { %1073 = vst [vmem:[%s1948_s10 + $0x8] sm:$0xff] %v999_v5 }
 0x38d   : > { %1072 = vst [vmem:[%s1948_s10] sm:$0xff] %v994_v7  ;;  %v1492_v8 = vpop.f32.mrb[18].mxu1 }
 0x38e   : > { %v1009_v9 = vadd.f32 %v1492_v8, %v1156_v3  ;;  %v1003_v10 = vpop.f32.mrb[19].mxu1 }
 0x38f   : > { %v1004_v11 = vadd.f32 %v1156_v3, %v1003_v10 }
 0x390   : > { %1075 = vst [vmem:[%s1948_s10 + $0x18] sm:$0xff] %v1009_v9 }
 0x391   : > { %1074 = vst [vmem:[%s1948_s10 + $0x10] sm:$0xff] %v1004_v11  ;;  %v1495_v12 = vpop.f32.mrb[20].mxu1 }
 0x392   : > { %v1019_v13 = vadd.f32 %v1495_v12, %v1156_v3  ;;  %v1013_v14 = vpop.f32.mrb[21].mxu1 }
 0x393   : > { %v1014_v15 = vadd.f32 %v1156_v3, %v1013_v14 }
 0x394   : > { %1077 = vst [vmem:[%s1948_s10 + $0x28] sm:$0xff] %v1019_v13 }
 0x395   : > { %1076 = vst [vmem:[%s1948_s10 + $0x20] sm:$0xff] %v1014_v15  ;;  %v1498_v16 = vpop.f32.mrb[22].mxu1 }
 0x396   : > { %v1029_v17 = vadd.f32 %v1498_v16, %v1156_v3  ;;  %v1023_v18 = vpop.f32.mrb[23].mxu1 }
 0x397   : > { %v1024_v19 = vadd.f32 %v1156_v3, %v1023_v18 }
 0x398   : > { %1079 = vst [vmem:[%s1948_s10 + $0x38] sm:$0xff] %v1029_v17 }
 0x399   : > { %1078 = vst [vmem:[%s1948_s10 + $0x30] sm:$0xff] %v1024_v19  ;;  %v1501_v20 = vpop.f32.mrb[24].mxu1 }
 0x39a   : > { %v1039_v21 = vadd.f32 %v1501_v20, %v1156_v3  ;;  %v1033_v22 = vpop.f32.mrb[25].mxu1 }
 0x39b   : > { %v1034_v23 = vadd.f32 %v1156_v3, %v1033_v22 }
 0x39c   : > { %1081 = vst [vmem:[%s1948_s10 + $0x48] sm:$0xff] %v1039_v21 }
 0x39d   : > { %1080 = vst [vmem:[%s1948_s10 + $0x40] sm:$0xff] %v1034_v23  ;;  %v1504_v24 = vpop.f32.mrb[26].mxu1 }
 0x39e   : > { %v1049_v25 = vadd.f32 %v1504_v24, %v1156_v3  ;;  %v1043_v26 = vpop.f32.mrb[27].mxu1 }
 0x39f   : > { %v1044_v27 = vadd.f32 %v1156_v3, %v1043_v26 }
 0x3a0   : > { %1083 = vst [vmem:[%s1948_s10 + $0x58] sm:$0xff] %v1049_v25 }
 0x3a1   : > { %1082 = vst [vmem:[%s1948_s10 + $0x50] sm:$0xff] %v1044_v27  ;;  %v1507_v28 = vpop.f32.mrb[28].mxu1 }
 0x3a2   : > { %v1059_v29 = vadd.f32 %v1507_v28, %v1156_v3  ;;  %v1053_v30 = vpop.f32.mrb[29].mxu1 }
 0x3a3   : > { %v1054_v31 = vadd.f32 %v1156_v3, %v1053_v30 }
 0x3a4   : > { %1085 = vst [vmem:[%s1948_s10 + $0x68] sm:$0xff] %v1059_v29 }
 0x3a5   : > { %1084 = vst [vmem:[%s1948_s10 + $0x60] sm:$0xff] %v1054_v31  ;;  %v1510_v32 = vpop.f32.mrb[30].mxu1 }
 0x3a6   : > { %v1069_v33 = vadd.f32 %v1510_v32, %v1156_v3  ;;  %v1063_v34 = vpop.f32.mrb[31].mxu1 }
 0x3a7   : > { %v1064_v35 = vadd.f32 %v1156_v3, %v1063_v34 }
 0x3a8   : > { %1087 = vst [vmem:[%s1948_s10 + $0x78] sm:$0xff] %v1069_v33 }
 0x3a9   : > { %1086 = vst [vmem:[%s1948_s10 + $0x70] sm:$0xff] %v1064_v35 }
 0x3aa PF: > { %s19_s30 = sadd.s32 1, %s1653_s30  }
 0x3ab   : > { %p16_p4 = scmp.ge.s32.totalorder %s19_s30, 4  }
 0x3ad   :  { %18 = sbr.rel (!%p16_p4) target bundleno = 1 (0x1), region = 86 }

</bundles_post_ra>
